<compile_context>
chip_gen: v6e
topology: v6e:2x2x1
jax: 0.10.0
libtpu: 0.0.40
codegen_flags: <defaults>
</compile_context>

<pallas_src>
import jax
import jax.numpy as jnp
from jax.experimental import pallas as pl
from jax.experimental.pallas import tpu as pltpu

_LANE = 128
_SMALL_GROUP_BYTES = 1 << 20     # coarsen the grid when one group's block is this small


def _round_up(x, m):
    return ((x + m - 1) // m) * m


def _cdiv(a, b):
    return -(-a // b)


def _vmem_capacity_bytes():
    try:
        return int(pltpu.get_tpu_info().vmem_capacity_bytes)
    except Exception:
        return 64 << 20          # conservative (v7x-sized) fallback


def _block_vmem_factor(itemsize):
    # 2x double-buffered input + 2x double-buffered output (HBM dtype) plus
    # ~2.5 f32-sized in-kernel temporaries per block.
    return 4.0 + 2.5 * (4.0 / itemsize)


def _vmem_limit(block_bytes, itemsize, vmem_cap):
    need = int(_block_vmem_factor(itemsize) * block_bytes) + (4 << 20)
    return int(min(vmem_cap, max(32 << 20, need)))


# ---------------------------------------------------------------------------
# Kernels
# ---------------------------------------------------------------------------

def _make_batch_kernel(n, eps):
    """One (G, Cg, HW) block per batch element; per-group two-pass stats."""
    inv_n = 1.0 / n
    inv_d = 1.0 / max(n - 1, 1)          # unbiased variance (torch .var() default)

    def kernel(x_ref, w_ref, b_ref, o_ref):
        # Re-read x_ref per phase so Mosaic need not hold a full f32 copy of the
        # block live for the whole kernel (VMEM loads are nearly free).
        x = x_ref[...].astype(jnp.float32)                           # (G, Cg, HW)
        mean = jnp.sum(jnp.sum(x, axis=2, keepdims=True),
                       axis=1, keepdims=True) * inv_n                # (G, 1, 1)
        d = x_ref[...].astype(jnp.float32) - mean                    # centered var
        var = jnp.sum(jnp.sum(d * d, axis=2, keepdims=True),
                      axis=1, keepdims=True) * inv_d
        inv = jax.lax.rsqrt(var + eps)                               # (G, 1, 1)
        a = inv * w_ref[...].astype(jnp.float32)                     # (G, Cg, 1)
        c = b_ref[...].astype(jnp.float32) - mean * a                # (G, Cg, 1)
        o_ref[...] = (x_ref[...].astype(jnp.float32) * a + c).astype(o_ref.dtype)

    return kernel


def _make_group_kernel(n, eps):
    """One (Cg, HW) block per (batch, group)."""
    inv_n = 1.0 / n
    inv_d = 1.0 / max(n - 1, 1)

    def kernel(x_ref, w_ref, b_ref, o_ref):
        g = pl.program_id(1)
        mean = jnp.sum(x_ref[...].astype(jnp.float32)) * inv_n       # scalar
        d = x_ref[...].astype(jnp.float32) - mean
        var = jnp.sum(d * d) * inv_d
        inv = jax.lax.rsqrt(var + eps)
        a = inv * w_ref[g].astype(jnp.float32)                       # (Cg, 1)
        c = b_ref[g].astype(jnp.float32) - mean * a
        o_ref[...] = (x_ref[...].astype(jnp.float32) * a + c).astype(o_ref.dtype)

    return kernel


def _make_stats_kernel(hw, thw):
    """HW-tiled pass 1: accumulate (sum, sumsq) into a resident (2, 1) block."""
    ragged = (hw % thw) != 0

    def kernel(x_ref, stat_ref):
        t = pl.program_id(2)

        @pl.when(t == 0)
        def _():
            stat_ref[...] = jnp.zeros_like(stat_ref)

        x = x_ref[...].astype(jnp.float32)                           # (Cg, tHW)
        if ragged:
            # Last tile is partial: zero the out-of-range lanes before reducing.
            col = jax.lax.broadcasted_iota(jnp.int32, x.shape, 1)
            x = jnp.where(col < (hw - t * thw), x, 0.0)
        stat_ref[0:1, :] += jnp.sum(x)
        stat_ref[1:2, :] += jnp.sum(x * x)

    return kernel


def _make_norm_kernel(n, eps):
    """HW-tiled pass 2: normalize + affine using the precomputed stats."""
    inv_n = 1.0 / n
    inv_d = 1.0 / max(n - 1, 1)

    def kernel(stat_ref, w_ref, b_ref, x_ref, o_ref):
        g = pl.program_id(1)
        st = stat_ref[...]                                           # (2, 1) f32
        mean = st[0:1, :] * inv_n                                    # (1, 1)
        # sum/sumsq formulation (f32 accumulation) only on the HBM-tiled path.
        var = (st[1:2, :] - mean * mean * n) * inv_d
        inv = jax.lax.rsqrt(var + eps)
        a = inv * w_ref[g].astype(jnp.float32)                       # (Cg, 1)
        c = b_ref[g].astype(jnp.float32) - mean * a
        o_ref[...] = (x_ref[...].astype(jnp.float32) * a + c).astype(o_ref.dtype)

    return kernel


# ---------------------------------------------------------------------------
# Wrapper
# ---------------------------------------------------------------------------

def group_norm_2d(x, weight, bias, num_groups, eps=1e-5, *,
                  max_block_bytes=None, force_mode=None):
    """x: (B, C, H, W); weight/bias: (1, C, 1, 1) like the PyTorch module."""
    B, C, H, W = x.shape
    assert C % num_groups == 0
    G = num_groups
    Cg = C // G
    HW = H * W
    n = Cg * HW                              # true element count per group
    itemsize = x.dtype.itemsize              # HBM-facing dtype (bf16 stays bf16)

    vmem_cap = _vmem_capacity_bytes()
    factor = _block_vmem_factor(itemsize)
    if max_block_bytes is None:
        # ~75% of physical VMEM split across I/O double-buffers + f32 temporaries.
        max_block_bytes = int(0.75 * vmem_cap / factor)

    # VMEM footprint is computed on the padded (sublane, lane) tile.
    sub = 8 * max(1, 4 // itemsize)
    cg_v = _round_up(Cg, sub)
    hw_v = _round_up(HW, _LANE)
    group_block_bytes = cg_v * hw_v * itemsize
    batch_block_bytes = G * group_block_bytes

    if force_mode is not None:
        mode = force_mode
    elif (group_block_bytes <= _SMALL_GROUP_BYTES
          and batch_block_bytes <= max_block_bytes
          and B >= 4):                       # >=4 parallel units keeps 2-TC parts busy
        mode = "batch"
    elif group_block_bytes <= max_block_bytes:
        mode = "group"
    else:
        mode = "tiled"                       # one group does not fit the VMEM budget

    w_r = weight.reshape(G, Cg, 1)
    b_r = bias.reshape(G, Cg, 1)
    x_r = x.reshape(B, G, Cg, HW)            # no padding: ragged HW handled in-kernel

    if mode == "batch":
        vmem_bytes = _vmem_limit(batch_block_bytes, itemsize, vmem_cap)
        out = pl.pallas_call(
            _make_batch_kernel(n, eps),
            out_shape=jax.ShapeDtypeStruct((B, G, Cg, HW), x.dtype),
            grid=(B,),
            in_specs=[
                pl.BlockSpec((None, G, Cg, HW), lambda b: (b, 0, 0, 0)),
                pl.BlockSpec((G, Cg, 1), lambda b: (0, 0, 0)),
                pl.BlockSpec((G, Cg, 1), lambda b: (0, 0, 0)),
            ],
            out_specs=pl.BlockSpec((None, G, Cg, HW), lambda b: (b, 0, 0, 0)),
            compiler_params=pltpu.CompilerParams(
                dimension_semantics=("parallel",),
                vmem_limit_bytes=vmem_bytes),
        )(x_r, w_r, b_r)

    elif mode == "group":
        vmem_bytes = _vmem_limit(group_block_bytes, itemsize, vmem_cap)
        out = pl.pallas_call(
            _make_group_kernel(n, eps),
            out_shape=jax.ShapeDtypeStruct((B, G, Cg, HW), x.dtype),
            grid=(B, G),
            in_specs=[
                pl.BlockSpec((None, None, Cg, HW), lambda b, g: (b, g, 0, 0)),
                pl.BlockSpec((G, Cg, 1), lambda b, g: (0, 0, 0)),
                pl.BlockSpec((G, Cg, 1), lambda b, g: (0, 0, 0)),
            ],
            out_specs=pl.BlockSpec((None, None, Cg, HW),
                                   lambda b, g: (b, g, 0, 0)),
            compiler_params=pltpu.CompilerParams(
                dimension_semantics=("parallel", "parallel"),
                vmem_limit_bytes=vmem_bytes),
        )(x_r, w_r, b_r)

    else:  # "tiled": two HW-tiled sweeps (stats, then normalize)
        min_tile_bytes = cg_v * _LANE * itemsize
        if int(factor * min_tile_bytes) + (4 << 20) > vmem_cap:
            # TODO(synk): channel (Cg) tiling fallback for extremely large Cg.
            raise NotImplementedError(
                "GroupNorm2D Pallas kernel: channels-per-group too large for VMEM")
        budget = max(max_block_bytes, min_tile_bytes)
        thw_max = max(_LANE, (budget // (cg_v * itemsize)) // _LANE * _LANE)
        # Near-even tiles: do NOT round HW up to a multiple of the tile size.
        thw = _round_up(_cdiv(HW, _cdiv(HW, thw_max)), _LANE)
        if thw >= HW:
            thw = HW                          # single full-extent (ragged) tile
        T = _cdiv(HW, thw)
        block_bytes = cg_v * _round_up(thw, _LANE) * itemsize
        vmem_bytes = _vmem_limit(block_bytes, itemsize, vmem_cap)

        stats = pl.pallas_call(
            _make_stats_kernel(HW, thw),
            out_shape=jax.ShapeDtypeStruct((B, G, 2, 1), jnp.float32),
            grid=(B, G, T),
            in_specs=[
                pl.BlockSpec((None, None, Cg, thw),
                             lambda b, g, t: (b, g, 0, t)),
            ],
            out_specs=pl.BlockSpec((None, None, 2, 1),
                                   lambda b, g, t: (b, g, 0, 0)),
            compiler_params=pltpu.CompilerParams(
                dimension_semantics=("parallel", "parallel", "arbitrary"),
                vmem_limit_bytes=vmem_bytes),
        )(x_r)

        out = pl.pallas_call(
            _make_norm_kernel(n, eps),
            out_shape=jax.ShapeDtypeStruct((B, G, Cg, HW), x.dtype),
            grid=(B, G, T),
            in_specs=[
                pl.BlockSpec((None, None, 2, 1),
                             lambda b, g, t: (b, g, 0, 0)),
                pl.BlockSpec((G, Cg, 1), lambda b, g, t: (0, 0, 0)),
                pl.BlockSpec((G, Cg, 1), lambda b, g, t: (0, 0, 0)),
                pl.BlockSpec((None, None, Cg, thw),
                             lambda b, g, t: (b, g, 0, t)),
            ],
            out_specs=pl.BlockSpec((None, None, Cg, thw),
                                   lambda b, g, t: (b, g, 0, t)),
            compiler_params=pltpu.CompilerParams(
                dimension_semantics=("parallel", "parallel", "arbitrary"),
                vmem_limit_bytes=vmem_bytes),
        )(stats, w_r, b_r, x_r)

    return out.reshape(B, C, H, W)


# ---------------------------------------------------------------------------
# Reference + self-test
# ---------------------------------------------------------------------------

def _reference(x, weight, bias, num_groups, eps=1e-5):
    B, C, H, W = x.shape
    xr = x.reshape(B, num_groups, -1).astype(jnp.float32)
    mean = xr.mean(axis=-1, keepdims=True)
    var = xr.var(axis=-1, keepdims=True, ddof=1)   # unbiased, like torch .var()
    xr = (xr - mean) / jnp.sqrt(var + eps)
    xr = xr.reshape(B, C, H, W)
    return xr * weight + bias


def _max_err(a, b):
    return float(jnp.max(jnp.abs(a.astype(jnp.float32) - b.astype(jnp.float32))))


if __name__ == "__main__":
    key = jax.random.PRNGKey(0)
    k1, k2, k3, k4, k5 = jax.random.split(key, 5)

    B, C, H, W = 2, 4, 16, 16
    num_groups = 2          # must divide C (module default 32 would not divide C=4)
    eps = 1e-5
    x = jax.random.normal(k1, (B, C, H, W), dtype=jnp.float32)
    w1 = jnp.ones((1, C, 1, 1), dtype=jnp.float32)
    b1 = jnp.zeros((1, C, 1, 1), dtype=jnp.float32)

    # Default path (group mode for B=2): module-default affine params.
    out = jax.block_until_ready(group_norm_2d(x, w1, b1, num_groups, eps))
    ref = _reference(x, w1, b1, num_groups, eps)
    assert out.shape == x.shape
    assert _max_err(out, ref) < 1e-4, "default/group-mode mismatch vs reference"

    # Non-trivial affine; exercise the coarse per-batch path.
    w2 = jax.random.normal(k2, (1, C, 1, 1), dtype=jnp.float32)
    b2 = jax.random.normal(k3, (1, C, 1, 1), dtype=jnp.float32)
    out_b = jax.block_until_ready(
        group_norm_2d(x, w2, b2, num_groups, eps, force_mode="batch"))
    assert _max_err(out_b, _reference(x, w2, b2, num_groups, eps)) < 1e-4, \
        "batch-mode mismatch vs reference"

    # HW-tiled two-pass path, HW divisible by the tile (256 = 2 x 128).
    out_t = jax.block_until_ready(
        group_norm_2d(x, w2, b2, num_groups, eps,
                      force_mode="tiled", max_block_bytes=1024))
    assert _max_err(out_t, _reference(x, w2, b2, num_groups, eps)) < 1e-4, \
        "tiled-mode mismatch vs reference"

    # Ragged HW (49 lanes) on the single-pass path: masked tail stores, no padding.
    x7 = jax.random.normal(k4, (2, 4, 7, 7), dtype=jnp.float32)
    out_p = jax.block_until_ready(group_norm_2d(x7, w2, b2, num_groups, eps))
    assert _max_err(out_p, _reference(x7, w2, b2, num_groups, eps)) < 1e-4, \
        "ragged-HW mismatch vs reference"

    # Ragged HW with a partial last tile on the tiled path (169 = 128 + 41).
    x13 = jax.random.normal(k5, (2, 4, 13, 13), dtype=jnp.float32)
    out_rt = jax.block_until_ready(
        group_norm_2d(x13, w2, b2, num_groups, eps,
                      force_mode="tiled", max_block_bytes=1024))
    assert _max_err(out_rt, _reference(x13, w2, b2, num_groups, eps)) < 1e-4, \
        "tiled ragged-HW mismatch vs reference"

    print("KERNEL_OK")
</pallas_src>

<mosaic_0001>
module attributes {stable_mosaic.version = 11 : i64} {
  func.func @kernel(%arg0: i32, %arg1: i32, %arg2: memref<1x1x2x256xf32, #tpu.memory_space<vmem>>, %arg3: memref<2x2x1xf32, #tpu.memory_space<vmem>>, %arg4: memref<2x2x1xf32, #tpu.memory_space<vmem>>, %arg5: memref<1x1x2x256xf32, #tpu.memory_space<vmem>>) attributes {dimension_semantics = [#tpu.dimension_semantics<parallel>, #tpu.dimension_semantics<parallel>], iteration_bounds = array<i64: 2, 2>, scalar_prefetch = 0 : i64, scratch_operands = 0 : i64, tpu.core_type = #tpu.core_type<tc>, window_params = [{transform_indices = @transform_0, window_bounds = array<i64: 1, 1, 2, 256>}, {pipeline_mode = #tpu.pipeline_mode<synchronous>, transform_indices = @transform_1, window_bounds = array<i64: 2, 2, 1>}, {pipeline_mode = #tpu.pipeline_mode<synchronous>, transform_indices = @transform_2, window_bounds = array<i64: 2, 2, 1>}, {transform_indices = @transform_3, window_bounds = array<i64: 1, 1, 2, 256>}]} {
    %c0 = arith.constant 0 : index
    %c0_0 = arith.constant 0 : index
    %c0_1 = arith.constant 0 : index
    %c0_2 = arith.constant 0 : index
    %0 = vector.load %arg2[%c0, %c0_0, %c0_1, %c0_2] : memref<1x1x2x256xf32, #tpu.memory_space<vmem>>, vector<1x1x2x256xf32>
    %1 = vector.shape_cast %0 : vector<1x1x2x256xf32> to vector<2x256xf32>
    %2 = vector.shape_cast %1 : vector<2x256xf32> to vector<1x2x256xf32>
    %cst = arith.constant dense<0.000000e+00> : vector<1xf32>
    %3 = vector.multi_reduction <add>, %2, %cst [1, 2] : vector<1x2x256xf32> to vector<1xf32>
    %4 = vector.shape_cast %3 : vector<1xf32> to vector<1x1x1xf32>
    %5 = vector.extract %4[0, 0, 0] : f32 from vector<1x1x1xf32>
    %cst_3 = arith.constant 0.001953125 : f32
    %6 = arith.mulf %5, %cst_3 : f32
    %c0_4 = arith.constant 0 : index
    %c0_5 = arith.constant 0 : index
    %c0_6 = arith.constant 0 : index
    %c0_7 = arith.constant 0 : index
    %7 = vector.load %arg2[%c0_4, %c0_5, %c0_6, %c0_7] : memref<1x1x2x256xf32, #tpu.memory_space<vmem>>, vector<1x1x2x256xf32>
    %8 = vector.shape_cast %7 : vector<1x1x2x256xf32> to vector<2x256xf32>
    %9 = vector.broadcast %6 : f32 to vector<2x256xf32>
    %10 = arith.subf %8, %9 : vector<2x256xf32>
    %11 = arith.mulf %10, %10 : vector<2x256xf32>
    %12 = vector.shape_cast %11 : vector<2x256xf32> to vector<1x2x256xf32>
    %cst_8 = arith.constant dense<0.000000e+00> : vector<1xf32>
    %13 = vector.multi_reduction <add>, %12, %cst_8 [1, 2] : vector<1x2x256xf32> to vector<1xf32>
    %14 = vector.shape_cast %13 : vector<1xf32> to vector<1x1x1xf32>
    %15 = vector.extract %14[0, 0, 0] : f32 from vector<1x1x1xf32>
    %cst_9 = arith.constant 0.00195694715 : f32
    %16 = arith.mulf %15, %cst_9 : f32
    %cst_10 = arith.constant 9.99999974E-6 : f32
    %17 = arith.addf %16, %cst_10 : f32
    %18 = math.rsqrt %17 : f32
    %19 = arith.index_cast %arg1 : i32 to index
    %c0_11 = arith.constant 0 : index
    %c0_12 = arith.constant 0 : index
    %20 = vector.load %arg3[%19, %c0_11, %c0_12] : memref<2x2x1xf32, #tpu.memory_space<vmem>>, vector<1x2x1xf32>
    %21 = vector.shape_cast %20 : vector<1x2x1xf32> to vector<2x1xf32>
    %22 = vector.broadcast %18 : f32 to vector<2x1xf32>
    %23 = arith.mulf %22, %21 : vector<2x1xf32>
    %24 = arith.index_cast %arg1 : i32 to index
    %c0_13 = arith.constant 0 : index
    %c0_14 = arith.constant 0 : index
    %25 = vector.load %arg4[%24, %c0_13, %c0_14] : memref<2x2x1xf32, #tpu.memory_space<vmem>>, vector<1x2x1xf32>
    %26 = vector.shape_cast %25 : vector<1x2x1xf32> to vector<2x1xf32>
    %27 = vector.broadcast %6 : f32 to vector<2x1xf32>
    %28 = arith.mulf %27, %23 : vector<2x1xf32>
    %29 = arith.subf %26, %28 : vector<2x1xf32>
    %c0_15 = arith.constant 0 : index
    %c0_16 = arith.constant 0 : index
    %c0_17 = arith.constant 0 : index
    %c0_18 = arith.constant 0 : index
    %30 = vector.load %arg2[%c0_15, %c0_16, %c0_17, %c0_18] : memref<1x1x2x256xf32, #tpu.memory_space<vmem>>, vector<1x1x2x256xf32>
    %31 = vector.shape_cast %30 : vector<1x1x2x256xf32> to vector<2x256xf32>
    %32 = vector.broadcast %23 : vector<2x1xf32> to vector<2x256xf32>
    %33 = arith.mulf %31, %32 : vector<2x256xf32>
    %34 = vector.broadcast %29 : vector<2x1xf32> to vector<2x256xf32>
    %35 = arith.addf %33, %34 : vector<2x256xf32>
    %c0_19 = arith.constant 0 : index
    %c0_20 = arith.constant 0 : index
    %c0_21 = arith.constant 0 : index
    %c0_22 = arith.constant 0 : index
    %36 = vector.load %arg5[%c0_19, %c0_20, %c0_21, %c0_22] : memref<1x1x2x256xf32, #tpu.memory_space<vmem>>, vector<1x1x2x256xf32>
    %37 = vector.shape_cast %36 : vector<1x1x2x256xf32> to vector<2x256xf32>
    %38 = vector.shape_cast %35 : vector<2x256xf32> to vector<1x1x2x256xf32>
    tpu.vector_store %arg5[%c0_19, %c0_20, %c0_21, %c0_22], %38 {strides = array<i32>} : memref<1x1x2x256xf32, #tpu.memory_space<vmem>>, vector<1x1x2x256xf32>,
    return
  }
  func.func @transform_0(%arg0: i32, %arg1: i32) -> (i32, i32, i32, i32) {
    %c0_i32 = arith.constant 0 : i32
    %c0_i32_0 = arith.constant 0 : i32
    %c0_i32_1 = arith.constant 0 : i32
    return %arg0, %arg1, %c0_i32, %c0_i32_0 : i32, i32, i32, i32
  }
  func.func @transform_1(%arg0: i32, %arg1: i32) -> (i32, i32, i32) {
    %c0_i32 = arith.constant 0 : i32
    %c0_i32_0 = arith.constant 0 : i32
    %c0_i32_1 = arith.constant 0 : i32
    %c0_i32_2 = arith.constant 0 : i32
    return %c0_i32, %c0_i32_0, %c0_i32_1 : i32, i32, i32
  }
  func.func @transform_2(%arg0: i32, %arg1: i32) -> (i32, i32, i32) {
    %c0_i32 = arith.constant 0 : i32
    %c0_i32_0 = arith.constant 0 : i32
    %c0_i32_1 = arith.constant 0 : i32
    %c0_i32_2 = arith.constant 0 : i32
    return %c0_i32, %c0_i32_0, %c0_i32_1 : i32, i32, i32
  }
  func.func @transform_3(%arg0: i32, %arg1: i32) -> (i32, i32, i32, i32) {
    %c0_i32 = arith.constant 0 : i32
    %c0_i32_0 = arith.constant 0 : i32
    %c0_i32_1 = arith.constant 0 : i32
    return %arg0, %arg1, %c0_i32, %c0_i32_0 : i32, i32, i32, i32
  }
}

</mosaic_0001>

<bundles_post_ra>
// kernel: tpu_custom_call.1
= control target key start
LH: loop header
LB: loop body
LE: loop exit
PB: predicated region body
PF: predicated region fallthrough
CT: control target
= control target key end

     0   :  { %8 = vsyncpa [#allocation3], 0  ;;  %s845_s0 = inlined_call_operand.hbm [shape: f32[2,2,2,256], index: 0, kind: input, shape index: {}]   ;;  %s846_s1 = inlined_call_operand.vmem [shape: f32[2,2,1], index: 1, kind: input, shape index: {}]   ;;  %s847_s2 = inlined_call_operand.vmem [shape: f32[2,2,1], index: 2, kind: input, shape index: {}]   ;;  %s848_s3 = inlined_call_operand.hbm [shape: f32[2,2,2,256], index: 3, kind: output, shape index: {}]  }
   0x1   :  { %10 = vsyncpa [#allocation3 + $0x1], 0 }
   0x2   :  { %11 = vsyncpa [#allocation4], 0 }
   0x3   :  { %13 = vsyncpa [#allocation4 + $0x1], 0  ;;  %s666_s12 = smov 0   ;;  %s668_s13 = smov 0  }
   0x4   :  { %s670_s14 = smov 0   ;;  %s672_s15 = smov 0  }
   0x5   :  { %s674_s16 = smov 0   ;;  %s676_s17 = smov 0  }
   0x6   :  { %s678_s18 = smov 0   ;;  %s680_s19 = smov 0  }
   0x7 LB: > { %s406_s20 = sadd.s32 4294967295, %s639_s19   ;;  %s407_s21 = sadd.s32 4294967294, %s639_s19   ;;  %s639_s19 = sphi %s680_s19, %s19_s19   ;;  %s635_s18 = sphi %s678_s18, %s864_s18   ;;  %s631_s17 = sphi %s676_s17, %s863_s17   ;;  %s627_s16 = sphi %s674_s16, %s862_s16   ;;  %s623_s15 = sphi %s672_s15, %s861_s15   ;;  %s619_s14 = sphi %s670_s14, %s860_s14   ;;  %s615_s13 = sphi %s668_s13, %s859_s13   ;;  %s611_s12 = sphi %s666_s12, %s858_s12  }
   0x8   : > { %s28_s22 = sadd.s32 1, %s631_s17  ;;  %s31_s23 = sadd.s32 1, %s635_s18 }
   0x9   : > { %p29_p0 = scmp.ge.s32.totalorder %s28_s22, 2  ;;  %s40_s24 = sadd.s32 1, %s619_s14 }
   0xa   : > { %p47_p1 = scmp.ne.s32.totalorder %s619_s14, %s615_s13  ;;  %p48_p2 = scmp.eq.s32.totalorder %s639_s19, 0 }
   0xb   : > { %s866_s22 = smov (%p29_p0, %s28_s22), 0  ;;  %s868_s23 = smov (!%p29_p0, %s31_s23), %s635_s18 }
   0xc   : > { %s36_s25 = ssub.s32 %s631_s17, %s866_s22  ;;  %p719_p3 = por %p48_p2, %p47_p1 }
   0xd   : > { %p33_p4 = scmp.ge.s32.totalorder %s868_s23, 2  ;;  %p53_p5 = scmp.ne.s32.totalorder %s615_s13, %s611_s12 }
   0xe   : > { %p54_p6 = scmp.eq.s32.totalorder %s406_s20, 0  ;;  %p121_p7 = scmp.eq.s32.totalorder %s406_s20, 3 }
   0xf   : > { %s870_s23 = smov (%p33_p4, %s868_s23), 0  ;;  %p127_p10 = scmp.eq.s32.totalorder %s407_s21, 3 }
  0x10   : > { %851 = sst [smem:[#allocation8_spill]] %s870_s23  ;;  %p727_p8 = por %p54_p6, %p53_p5 }
  0x11   : > { %p731_p9 = por %p121_p7, %p47_p1  ;;  %s35_s29 = ssub.s32 %s635_s18, %s870_s23 }
  0x12   : > { %s37_s30 = sor.u32 %s36_s25, %s35_s29  ;;  %p737_p12 = por %p127_p10, %p53_p5 }
  0x13   : > { %p38_p11 = scmp.eq.s32.totalorder %s37_s30, 0  ;;  %p442_p13 = scmp.lt.s32.totalorder %s639_s19, 4 }
  0x14   : > { %s854_s4 = scalar_select %p737_p12, 1, 0 }
  0x15   : > { %s153_s5 = sand.u32 1, %s619_s14   ;;  %s411_s8 = sshll.u32 %s631_s17, 1 }
  0x16   : > { %s744_s6 = scalar_select %p38_p11, %s619_s14, %s40_s24  }
  0x17   : > { %s410_s7 = sshll.u32 %s153_s5, 2  ;;  %s412_s9 = sshll.u32 %s635_s18, 2 }
  0x18   : > { %s157_s10 = scalar_lea.vmem [#allocation2], %s410_s7  ;;  %s163_s20 = sadd.s32 %s412_s9, %s411_s8 }
  0x19   : > { %s167_s11 = sshll.u32 %s157_s10, 4  ;;  %s413_s21 = sshll.u32 %s163_s20, 5  ;;  %s168_s11 = int_to_ptr.vmem [resolvable:$true] %s167_s11 }
  0x1a   : > { %p750_p0 = pnand %p442_p13, %p719_p3  ;;  %s165_s23 = scalar_lea.hbm %s845_s0, %s413_s21 }
  0x1b   : > { %p414_p1 = scmp.ge.s32.totalorder %s639_s19, 1  ;;  %p172_p2 = scmp.lt.s32.totalorder %s639_s19, 5 }
  0x1c   : > { %s154_s24 = scalar_lea.sflag [#allocation3], %s153_s5  ;;  %p517_p4 = pneg %p750_p0 }
  0x1d   : > { %s528_s7 = scalar_lea.vmem %s168_s11, 64  ;;  %s641_s8 = smov [#allocation2]  }
  0x1e   : > { %p529_p5 = scmp.ne.s32.totalorder %s168_s11, %s528_s7  ;;  %s533_s26 = sshll.u32 %s641_s8, 4  ;;  %s534_s26 = int_to_ptr.vmem [resolvable:$false] %s533_s26 }
  0x1f   : > { %s535_s9 = scalar_lea.vmem %s534_s26, 128  ;;  %p536_p3 = scmp.lt.s32.totalorder %s168_s11, %s534_s26 }
  0x20   : > { %p531_p6 = pnand %p529_p5, %p517_p4  ;;  %p537_p10 = scmp.lt.s32.totalorder %s535_s9, %s528_s7 }
  0x22   : > { %p532_p7 = pneg %p531_p6  ;;  %p538_p11 = por %p537_p10, %p536_p3 }
  0x24   : > { %p539_p13 = pnand %p538_p11, %p532_p7 }
  0x26   : > { %542 = shalt.err (!%p539_p13)
}
  0x27   : > { %437 = dma.hbm_to_vmem [thread:$0]  (!%p750_p0), %s165_s23, 64, %s168_s11, %s154_s24  }
  0x28   : > { %p173_p12 = pnand %p414_p1, %p172_p2 }
  0x29   : > { %s768_s5 = sand.u32 (!%p173_p12), 1, %s615_s13  }
  0x2a   : > { %176 = sbr.rel (%p173_p12) target bundleno = 693 (0x2b5), region = 32  ;;  %s415_s10 = sshll.u32 (!%p173_p12), %s768_s5, 2 }
  0x2b   : > { %s179_s20 = scalar_lea.sflag (!%p173_p12), [#allocation3], %s768_s5  ;;  %s182_s21 = scalar_lea.vmem (!%p173_p12), [#allocation2], %s415_s10 }
  0x2f   : > { %602 = dma.done.wait (%p727_p8), %s179_s20, 64  }
  0x30   : > { %604 = vsyncadd (%p727_p8), %s179_s20, 4294967232  ;;  %v210_v0 = vlaneseq  ;;  %v642_v1 = vmov 1983009808   ;;  %v781_v6 = vld [vmem:[%s182_s21] sm:$0xf]  ;;  %vm217_vm0 = vcmask 1041408  }
  0x31   : > { %v208_v2 = vunpack.c.l.s4 %v642_v1  ;;  %v643_v31 = vmov 0   ;;  %s417_s30 = sshll.u32 %s623_s15, 1  ;;  %v644_v43 = vmov 269488144   ;;  %s420_s15 = sshll.u32 %s627_s16, 2 }
  0x32   : > { %v778_v3 = vshrl.u32 %v210_v0, 7  ;;  %511 = vset.pattern.permute.xlu1 %v643_v31  ;;  %512 = vset.pattern.permute.xlu0 %v643_v31  ;;  %s263_s8 = scalar_lea.vmem %s846_s1, %s417_s30  ;;  %s267_s21 = scalar_lea.vmem %s847_s2, %s417_s30  ;;  %v276_v44 = vunpack.c.l.s4 %v644_v43 }
  0x33   : > { %v209_v4 = vunpack.c.0.s8 %v208_v2  ;;  %v264_v37 = vld [vmem:[%s263_s8] sm:$0x3]  ;;  %s299_s16 = scalar_lea.sflag [#allocation4], %s768_s5 }
  0x34   : > { %v268_v40 = vld [vmem:[%s267_s21] sm:$0x3]  ;;  %v277_v45 = vunpack.c.0.s8 %v276_v44 }
  0x35   : > { %v212_v5 = vsub.s32 %v209_v4, %v778_v3 }
  0x36   : > { %v280_v46 = vsub.s32 %v277_v45, %v778_v3 }
  0x37   : > { %v213_v7 = vrot.slane %v781_v6, %v212_v5 }
  0x39   : > { %v214_v8 = vcombine.high %v213_v7, %v213_v7  ;;  %v218_v9 = vsel %vm217_vm0, %v213_v7, 0.0 }
  0x3b   : > { %v219_v10 = vsel %vm217_vm0, %v214_v8, 0.0 }
  0x3c   : > { %v220_v11 = vadd.f32 %v219_v10, %v218_v9 }
  0x3e   : > { %221 = vadd.xlane.f32.xlu0 %v220_v11 }
  0xc7   : > { %v222_v12 = vpop.xlane.xlu0 %221 }
  0xc8   : > { %v223_v13 = vrot.slane %v222_v12, 4 }
  0xca   : > { %v224_v14 = vadd.f32 %v223_v13, %v222_v12 }
  0xcc   : > { %v225_v15 = vrot.slane %v224_v14, 2 }
  0xce   : > { %v226_v16 = vadd.f32 %v225_v15, %v224_v14 }
  0xd0   : > { %v227_v17 = vrot.slane %v226_v16, 1 }
  0xd2   : > { %v228_v18 = vadd.f32 %v227_v17, %v226_v16 }
  0xd4   : > { %424 = vpush %v228_v18 }
 0x105   : > { %s425_s23 = spop %424 }
 0x106   : > { %s230_s27 = smul.f32 0.001953125, %s425_s23  ;;  %s311_s23 = sadd.s32 %s420_s15, %s417_s30 }
 0x107   : > { %s645_s30 = smov [#allocation5]  }
 0x108   : > { %v231_v19 = vstv %s230_s27  ;;  %s421_s27 = sshll.u32 %s311_s23, 5 }
 0x109   : > { %v232_v20 = vsub.f32 %v781_v6, %v231_v19  ;;  %s313_s7 = scalar_lea.hbm %s848_s3, %s421_s27 }
 0x10b   : > { %v233_v21 = vmul.f32 %v232_v20, %v232_v20 }
 0x10d   : > { %v241_v22 = vrot.slane %v233_v21, %v212_v5 }
 0x10f   : > { %v242_v23 = vcombine.high %v241_v22, %v241_v22  ;;  %v245_v24 = vsel %vm217_vm0, %v241_v22, 0.0 }
 0x111   : > { %v246_v25 = vsel %vm217_vm0, %v242_v23, 0.0 }
 0x112   : > { %v247_v26 = vadd.f32 %v246_v25, %v245_v24 }
 0x114   : > { %248 = vadd.xlane.f32.xlu0 %v247_v26 }
 0x19d   : > { %v249_v27 = vpop.xlane.xlu0 %248 }
 0x19e   : > { %v250_v28 = vrot.slane %v249_v27, 4 }
 0x1a0   : > { %v251_v29 = vadd.f32 %v250_v28, %v249_v27 }
 0x1a2   : > { %v252_v30 = vrot.slane %v251_v29, 2 }
 0x1a4   : > { %v253_v32 = vadd.f32 %v252_v30, %v251_v29 }
 0x1a6   : > { %v254_v33 = vrot.slane %v253_v32, 1 }
 0x1a8   : > { %v255_v34 = vadd.f32 %v254_v33, %v253_v32 }
 0x1aa   : > { %426 = vpush %v255_v34 }
 0x1db   : > { %s427_s11 = spop %426 }
 0x1dc   : > { %s257_s25 = smul.f32 0.0019569471, %s427_s11  ;;  %s204_s11 = scalar_lea.vmem [#allocation5], %s415_s10 }
 0x1de   : > { %s258_s29 = sadd.f32 1e-05, %s257_s25  ;;  %s315_s25 = sshll.u32 %s204_s11, 4  ;;  %s316_s25 = int_to_ptr.vmem [resolvable:$true] %s315_s25 }
 0x1df   : > { %s543_s8 = scalar_lea.vmem %s316_s25, 64 }
 0x1e0   : > { %v259_v35 = vstv %s258_s29  ;;  %p544_p8 = scmp.ne.s32.totalorder %s316_s25, %s543_s8 }
 0x1e1   : > { %513 = vrsqrt.f32 %v259_v35 }
 0x1e2   : > { %p545_p12 = pnand %p544_p8, %p731_p9 }
 0x1e4   : > { %p546_p0 = pneg %p545_p12 }
 0x1ee   : > { %v514_v36 = vpop.eup %513 }
 0x1ef   : > { %428 = vpush %v514_v36 }
 0x220   : > { %s429_s26 = spop %428 }
 0x221   : > { %v265_v38 = vstv %s429_s26  ;;  %s547_s26 = sshll.u32 %s645_s30, 4  ;;  %s548_s26 = int_to_ptr.vmem [resolvable:$false] %s547_s26 }
 0x222   : > { %v266_v39 = vmul.f32 %v265_v38, %v264_v37  ;;  %s549_s10 = scalar_lea.vmem %s548_s26, 128  ;;  %p550_p1 = scmp.lt.s32.totalorder %s316_s25, %s548_s26 }
 0x223   : > { %p551_p2 = scmp.lt.s32.totalorder %s549_s10, %s543_s8 }
 0x224   : > { %v269_v41 = vmul.f32 %v266_v39, %v231_v19  ;;  %273 = vperm.xlu1 %511, %v266_v39  }
 0x225   : > { %p552_p4 = por %p551_p2, %p550_p1 }
 0x226   : > { %v270_v42 = vsub.f32 %v268_v40, %v269_v41 }
 0x227   : > { %p553_p5 = pnand %p552_p4, %p546_p0 }
 0x228   : > { %286 = vperm.xlu1 %511, %v270_v42  }
 0x29f   : > { %v274_v47 = vpop.permute.xlu1 %273 }
 0x2a0   : > { %v281_v48 = vrot.slane %v274_v47, %v280_v46 }
 0x2a2   : > { %v283_v50 = vmul.f32 %v281_v48, %v781_v6 }
 0x2a3   : > { %v287_v49 = vpop.permute.xlu1 %286 }
 0x2a4   : > { %v294_v51 = vrot.slane %v287_v49, %v280_v46 }
 0x2a6   : > { %v296_v52 = vadd.f32 %v294_v51, %v283_v50 }
 0x2a8   : > { %297 = vst [vmem:[%s204_s11] sm:$0xf] %v296_v52 }
 0x2a9   : > { %556 = shalt.err (!%p553_p5)
}
 0x2aa   : > { %s557_s9 = scalar_lea.hbm %s313_s7, 64  ;;  %s561_s21 = scalar_lea.hbm %s848_s3, 256 }
 0x2ab   : > { %p558_p6 = scmp.ne.s32.totalorder %s313_s7, %s557_s9  ;;  %p562_p10 = scmp.lt.s32.totalorder %s313_s7, %s848_s3 }
 0x2ac   : > { %p563_p11 = scmp.lt.s32.totalorder %s561_s21, %s557_s9 }
 0x2ad   : > { %p559_p7 = pnand %p558_p6, %p731_p9 }
 0x2ae   : > { %p564_p13 = por %p563_p11, %p562_p10 }
 0x2af   : > { %p560_p3 = pneg %p559_p7 }
 0x2b1   : > { %p565_p8 = pnand %p564_p13, %p560_p3 }
 0x2b3   : > { %568 = shalt.err (!%p565_p8)
}
 0x2b4   : > { %432 = dma.vmem_to_hbm [thread:$0]  (%p731_p9), %s316_s25, 64, %s313_s7, %s299_s16  }
 0x2b5 PF: > { %p443_p12 = scmp.ge.s32.totalorder %s639_s19, 2  ;;  %s327_s27 = sand.u32 1, %s611_s12  }
 0x2b6   : > { %p856_p0 = scmp.ne.s32.totalorder %s854_s4, 0  ;;  %s328_s11 = scalar_lea.sflag [#allocation4], %s327_s27 }
 0x2b8   : > { %p439_p1 = pnand %p443_p12, %p856_p0 }
 0x2ba   : > { %p440_p2 = pneg %p439_p1 }
 0x2bc   : > { %606 = dma.done.wait (%p440_p2), %s328_s11, 64  }
 0x2bd   : > { %608 = vsyncadd (%p440_p2), %s328_s11, 4294967232  ;;  %s19_s19 = sadd.s32 1, %s639_s19   ;;  %s857_s28 = sld [smem:[#allocation8_spill]] }
 0x2be   : > { %p16_p4 = scmp.ge.s32.totalorder %s19_s19, 6   ;;  %s858_s12 = smov %s615_s13 }
 0x2bf   : > { %s859_s13 = smov %s619_s14  ;;  %s860_s14 = smov %s744_s6 }
 0x2c0   : > { %s861_s15 = smov %s631_s17  ;;  %s862_s16 = smov %s635_s18 }
 0x2c1   : > { %s863_s17 = smov %s866_s22  ;;  %18 = sbr.rel (!%p16_p4) target bundleno = 7 (0x7), region = 79 }
 0x2c3   : > { %s864_s18 = smov %s857_s28 }
 0x2c6   :  { %333 = vsyncpa [#allocation3], 1 }
 0x2c7   :  { %335 = vsyncpa [#allocation3 + $0x1], 1 }
 0x2c8   :  { %336 = vsyncpa [#allocation4], 1 }
 0x2c9   :  { %338 = vsyncpa [#allocation4 + $0x1], 1 }

</bundles_post_ra>
